<compile_context>
chip_gen: v7x
topology: tpu7x:2x2x1
jax: 0.10.0
libtpu: 0.0.40
codegen_flags: <defaults>
</compile_context>

<pallas_src>
import functools

import jax
import jax.numpy as jnp
from jax.experimental import pallas as pl
from jax.experimental.pallas import tpu as pltpu


def _round_up(n, m):
    return ((n + m - 1) // m) * m


def _tensorcores_per_chip():
    # v7x has 2 TensorCores per chip; v5e/v6e have 1.
    try:
        kind = jax.devices()[0].device_kind.lower()
    except Exception:
        return 1
    if ("v7" in kind) or ("tpu7" in kind) or ("7x" in kind):
        return 2
    return 1


# ---------------------------------------------------------------------------
# Fused kernel: Bb images per grid step.
#   x_ref     : (Bb, Cin, N)   N = H*W, channels on sublanes, spatial on lanes
#   slab_ref  : (R, LANE)      packed, BN-folded weights + shifts
#   masks_ref : (4, Csq, N)    {0,1} boundary masks for the depthwise convs
#   o_ref     : (Bb, Ce1+Cek, N)
# ---------------------------------------------------------------------------
def spark_kernel(x_ref, slab_ref, masks_ref, o_ref, *,
                 H, W, Cin, Csq, Ce1, Cek,
                 off_sq, off_e1, off_ek, off_dw, Bb):
    N = H * W

    # --- unpack the single packed weight slab (static slices) ---
    wsq = slab_ref[off_sq:off_sq + Csq, 0:Cin]           # (Csq, Cin)
    tsq = slab_ref[off_sq:off_sq + Csq, Cin:Cin + 1]     # (Csq, 1)
    we1 = slab_ref[off_e1:off_e1 + Ce1, 0:Csq]           # (Ce1, Csq)
    te1 = slab_ref[off_e1:off_e1 + Ce1, Csq:Csq + 1]     # (Ce1, 1)
    wek = slab_ref[off_ek:off_ek + Cek, 0:Csq]           # (Cek, Csq)
    tek = slab_ref[off_ek:off_ek + Cek, Csq:Csq + 1]     # (Cek, 1)
    dw = slab_ref[off_dw:off_dw + Csq, 0:8]              # (Csq, 8)
    w1l, w1c, w1r, b1 = dw[:, 0:1], dw[:, 1:2], dw[:, 2:3], dw[:, 3:4]
    w2u, w2c, w2d, t2 = dw[:, 4:5], dw[:, 5:6], dw[:, 6:7], dw[:, 7:8]

    # --- precomputed {0,1} boundary masks (loaded once, hoisted) ---
    m_wl = masks_ref[0]                                  # (Csq, N) w > 0
    m_wr = masks_ref[1]                                  # w < W-1
    m_hu = masks_ref[2]                                  # h > 0
    m_hd = masks_ref[3]                                  # h < H-1

    def pw_relu(wT, t, inp):
        # 1x1 conv + folded BN + ReLU on the MXU (otherwise-idle slot).
        acc = jnp.dot(wT, inp, preferred_element_type=jnp.float32)
        return jnp.maximum(acc + t, 0.0)

    for b in range(Bb):                                  # static unroll (Bb<=2)
        x = x_ref[b]                                     # (Cin, N)

        # squeeze: 1x1 conv + folded BN + ReLU
        sq = pw_relu(wsq, tsq, x)                        # (Csq, N)

        # branch 1: expand 1x1 conv + folded BN + ReLU
        e1 = pw_relu(we1, te1, sq)                       # (Ce1, N)

        # branch 2a: depthwise (1,3), padding (0,1), bias, ReLU
        sq_l = m_wl * pltpu.roll(sq, 1, axis=1)          # tap at w-1
        sq_r = m_wr * pltpu.roll(sq, N - 1, axis=1)      # tap at w+1
        h1 = jnp.maximum(w1l * sq_l + w1c * sq + w1r * sq_r + b1, 0.0)

        # branch 2b: depthwise (3,1), padding (1,0), folded BN, ReLU
        h1_u = m_hu * pltpu.roll(h1, W, axis=1)          # tap at h-1
        h1_d = m_hd * pltpu.roll(h1, N - W, axis=1)      # tap at h+1
        h2 = jnp.maximum(w2u * h1_u + w2c * h1 + w2d * h1_d + t2, 0.0)

        # branch 2c: final 1x1 conv + folded BN + ReLU
        ek = pw_relu(wek, tek, h2)                       # (Cek, N)

        # channel concat: two disjoint sublane-aligned stores
        o_ref[b, 0:Ce1, :] = e1
        o_ref[b, Ce1:Ce1 + Cek, :] = ek


def spark_forward(x_nchw, kp):
    B, Cin, H, W = x_nchw.shape
    N = H * W
    Csq = kp["wsq"].shape[0]
    Ce1 = kp["we1"].shape[0]
    Cek = kp["wek"].shape[0]
    Cout = Ce1 + Cek
    f = jnp.float32

    # NCHW with flattened spatial is already (channels-on-sublanes, N-on-lanes)
    x = x_nchw.reshape(B, Cin, N).astype(f)

    # ---- pack all weights / folded shifts into one (R, LANE) slab ----
    widths = [Cin + 1, Csq + 1, Csq + 1, 8]
    lane = _round_up(max(widths + [128]), 128)

    def pad_block(mat):
        r, c = mat.shape
        return jnp.pad(mat.astype(f), ((0, _round_up(r, 8) - r), (0, lane - c)))

    blk_sq = pad_block(jnp.concatenate([kp["wsq"], kp["tsq"]], axis=1))
    blk_e1 = pad_block(jnp.concatenate([kp["we1"], kp["te1"]], axis=1))
    blk_ek = pad_block(jnp.concatenate([kp["wek"], kp["tek"]], axis=1))
    blk_dw = pad_block(jnp.concatenate(
        [kp["wdw1"], kp["bdw1"], kp["wdw2"], kp["tdw2"]], axis=1))
    off_sq = 0
    off_e1 = off_sq + blk_sq.shape[0]
    off_ek = off_e1 + blk_e1.shape[0]
    off_dw = off_ek + blk_ek.shape[0]
    slab = jnp.concatenate([blk_sq, blk_e1, blk_ek, blk_dw], axis=0)
    R = slab.shape[0]

    # ---- precomputed {0,1} boundary-mask planes for the depthwise convs ----
    pos = jnp.arange(N, dtype=jnp.int32)
    wpos = pos % W
    masks = jnp.stack([(wpos > 0), (wpos < W - 1),
                       (pos >= W), (pos < (H - 1) * W)]).astype(f)  # (4, N)
    masks = jnp.broadcast_to(masks[:, None, :], (4, Csq, N))

    # grid: 1 step on single-TC chips (v5e/v6e); batch split over 2 TCs on v7x
    ng = _tensorcores_per_chip()
    if ng > B or B % ng != 0:
        ng = 1
    Bb = B // ng

    kernel = functools.partial(
        spark_kernel, H=H, W=W, Cin=Cin, Csq=Csq, Ce1=Ce1, Cek=Cek,
        off_sq=off_sq, off_e1=off_e1, off_ek=off_ek, off_dw=off_dw, Bb=Bb)

    out = pl.pallas_call(
        kernel,
        out_shape=jax.ShapeDtypeStruct((B, Cout, N), f),
        grid_spec=pltpu.PrefetchScalarGridSpec(
            num_scalar_prefetch=0,
            grid=(ng,),
            in_specs=[
                pl.BlockSpec((Bb, Cin, N), lambda g: (g, 0, 0)),   # images
                pl.BlockSpec((R, lane), lambda g: (0, 0)),         # weight slab
                pl.BlockSpec((4, Csq, N), lambda g: (0, 0, 0)),    # masks
            ],
            out_specs=pl.BlockSpec((Bb, Cout, N), lambda g: (g, 0, 0)),
        ),
        compiler_params=pltpu.CompilerParams(dimension_semantics=("parallel",)),
    )(x, slab, masks)

    return out.reshape(B, Cout, H, W)


# ---------------------------------------------------------------------------
# Deterministic parameter init + BN folding (glue, plain JAX, tiny arrays)
# ---------------------------------------------------------------------------
def init_params(key, in_channels, squeeze, expand_1x1, expand_kxk):
    keys = iter(jax.random.split(key, 32))
    f = jnp.float32

    def rnd(shape, scale=0.1):
        return (scale * jax.random.normal(next(keys), shape)).astype(f)

    def bn(c):
        gamma = 1.0 + rnd((c,), 0.05)
        beta = rnd((c,), 0.05)
        mean = rnd((c,), 0.05)
        var = 1.0 + jnp.abs(rnd((c,), 0.05))
        return gamma, beta, mean, var

    p = {}
    p["w_sq"] = rnd((in_channels, squeeze)); p["b_sq"] = rnd((squeeze,), 0.05)
    p["bn_sq"] = bn(squeeze)
    p["w_e1"] = rnd((squeeze, expand_1x1)); p["b_e1"] = rnd((expand_1x1,), 0.05)
    p["bn_e1"] = bn(expand_1x1)
    p["w_dw1"] = rnd((squeeze, 3)); p["b_dw1"] = rnd((squeeze,), 0.05)
    p["w_dw2"] = rnd((squeeze, 3)); p["b_dw2"] = rnd((squeeze,), 0.05)
    p["bn_dw2"] = bn(squeeze)
    p["w_ek"] = rnd((squeeze, expand_kxk)); p["b_ek"] = rnd((expand_kxk,), 0.05)
    p["bn_ek"] = bn(expand_kxk)
    return p


def prepare_kernel_params(p, eps=1e-5):
    f = jnp.float32

    def fold_pw(w, b, bn_params):
        gamma, beta, mean, var = bn_params
        s = gamma / jnp.sqrt(var + eps)
        wT_f = (w * s[None, :]).T                        # (Cout, Cin), BN-scaled
        t = (beta + (b - mean) * s)[:, None]             # (Cout, 1)
        return wT_f.astype(f), t.astype(f)

    kp = {}
    kp["wsq"], kp["tsq"] = fold_pw(p["w_sq"], p["b_sq"], p["bn_sq"])
    kp["we1"], kp["te1"] = fold_pw(p["w_e1"], p["b_e1"], p["bn_e1"])
    kp["wdw1"] = p["w_dw1"].astype(f)                    # (Csq, 3)
    kp["bdw1"] = p["b_dw1"][:, None].astype(f)           # (Csq, 1)
    gamma, beta, mean, var = p["bn_dw2"]
    s2 = gamma / jnp.sqrt(var + eps)
    kp["wdw2"] = (p["w_dw2"] * s2[:, None]).astype(f)    # BN scale in taps
    kp["tdw2"] = (beta + (p["b_dw2"] - mean) * s2)[:, None].astype(f)
    kp["wek"], kp["tek"] = fold_pw(p["w_ek"], p["b_ek"], p["bn_ek"])
    return kp


# ---------------------------------------------------------------------------
# Pure-JAX reference (same folded params) for correctness check
# ---------------------------------------------------------------------------
def reference_forward(x_nchw, kp):
    f = jnp.float32
    hp = jax.lax.Precision.HIGHEST
    x = x_nchw.astype(f)
    B, Cin, H, W = x.shape

    def pw(wT, t, y):
        out = jnp.einsum("oc,bchw->bohw", wT, y, precision=hp)
        return jnp.maximum(out + t[None, :, :, None], 0.0)

    sq = pw(kp["wsq"], kp["tsq"], x)
    e1 = pw(kp["we1"], kp["te1"], sq)

    w1, b1 = kp["wdw1"], kp["bdw1"]
    xp = jnp.pad(sq, ((0, 0), (0, 0), (0, 0), (1, 1)))
    h1 = (w1[None, :, 0, None, None] * xp[:, :, :, 0:W] +
          w1[None, :, 1, None, None] * xp[:, :, :, 1:W + 1] +
          w1[None, :, 2, None, None] * xp[:, :, :, 2:W + 2] +
          b1[None, :, :, None])
    h1 = jnp.maximum(h1, 0.0)

    w2, t2 = kp["wdw2"], kp["tdw2"]
    hpd = jnp.pad(h1, ((0, 0), (0, 0), (1, 1), (0, 0)))
    h2 = (w2[None, :, 0, None, None] * hpd[:, :, 0:H, :] +
          w2[None, :, 1, None, None] * hpd[:, :, 1:H + 1, :] +
          w2[None, :, 2, None, None] * hpd[:, :, 2:H + 2, :] +
          t2[None, :, :, None])
    h2 = jnp.maximum(h2, 0.0)

    ek = pw(kp["wek"], kp["tek"], h2)
    return jnp.concatenate([e1, ek], axis=1)


if __name__ == "__main__":
    key = jax.random.PRNGKey(0)
    B, Cin, H, W = 2, 8, 16, 16
    squeeze, expand_1x1, expand_kxk = 8, 8, 8

    kx, kpkey = jax.random.split(key)
    x = jax.random.normal(kx, (B, Cin, H, W), dtype=jnp.float32)
    params = init_params(kpkey, Cin, squeeze, expand_1x1, expand_kxk)
    kparams = prepare_kernel_params(params)

    fwd = jax.jit(spark_forward)
    out = jax.block_until_ready(fwd(x, kparams))

    assert out.shape == (B, expand_1x1 + expand_kxk, H, W), out.shape
    assert bool(jnp.all(jnp.isfinite(out)))

    ref = jax.block_until_ready(jax.jit(reference_forward)(x, kparams))
    err = float(jnp.max(jnp.abs(out - ref)))
    assert err < 2e-3, f"max abs error vs reference: {err}"

    print("KERNEL_OK")
</pallas_src>

<mosaic_0001>
module attributes {stable_mosaic.version = 11 : i64} {
  func.func @spark_kernel(%arg0: i32, %arg1: memref<2x8x256xf32, #tpu.memory_space<vmem>>, %arg2: memref<32x128xf32, #tpu.memory_space<vmem>>, %arg3: memref<4x8x256xf32, #tpu.memory_space<vmem>>, %arg4: memref<2x16x256xf32, #tpu.memory_space<vmem>>) attributes {dimension_semantics = [#tpu.dimension_semantics<parallel>], iteration_bounds = array<i64: 1>, scalar_prefetch = 0 : i64, scratch_operands = 0 : i64, tpu.core_type = #tpu.core_type<tc>, window_params = [{transform_indices = @transform_0, window_bounds = array<i64: 2, 8, 256>}, {pipeline_mode = #tpu.pipeline_mode<synchronous>, transform_indices = @transform_1, window_bounds = array<i64: 32, 128>}, {pipeline_mode = #tpu.pipeline_mode<synchronous>, transform_indices = @transform_2, window_bounds = array<i64: 4, 8, 256>}, {transform_indices = @transform_3, window_bounds = array<i64: 2, 16, 256>}]} {
    %c0 = arith.constant 0 : index
    %c0_0 = arith.constant 0 : index
    %0 = vector.load %arg2[%c0, %c0_0] : memref<32x128xf32, #tpu.memory_space<vmem>>, vector<8x8xf32>
    %c0_1 = arith.constant 0 : index
    %c8 = arith.constant 8 : index
    %1 = vector.load %arg2[%c0_1, %c8] : memref<32x128xf32, #tpu.memory_space<vmem>>, vector<8x1xf32>
    %c8_2 = arith.constant 8 : index
    %c0_3 = arith.constant 0 : index
    %2 = vector.load %arg2[%c8_2, %c0_3] : memref<32x128xf32, #tpu.memory_space<vmem>>, vector<8x8xf32>
    %c8_4 = arith.constant 8 : index
    %c8_5 = arith.constant 8 : index
    %3 = vector.load %arg2[%c8_4, %c8_5] : memref<32x128xf32, #tpu.memory_space<vmem>>, vector<8x1xf32>
    %c16 = arith.constant 16 : index
    %c0_6 = arith.constant 0 : index
    %4 = vector.load %arg2[%c16, %c0_6] : memref<32x128xf32, #tpu.memory_space<vmem>>, vector<8x8xf32>
    %c16_7 = arith.constant 16 : index
    %c8_8 = arith.constant 8 : index
    %5 = vector.load %arg2[%c16_7, %c8_8] : memref<32x128xf32, #tpu.memory_space<vmem>>, vector<8x1xf32>
    %c24 = arith.constant 24 : index
    %c0_9 = arith.constant 0 : index
    %6 = vector.load %arg2[%c24, %c0_9] : memref<32x128xf32, #tpu.memory_space<vmem>>, vector<8x8xf32>
    %7 = vector.extract_strided_slice %6 {offsets = [0, 0], sizes = [8, 1], strides = [1, 1]} : vector<8x8xf32> to vector<8x1xf32>
    %8 = vector.extract_strided_slice %6 {offsets = [0, 1], sizes = [8, 1], strides = [1, 1]} : vector<8x8xf32> to vector<8x1xf32>
    %9 = vector.extract_strided_slice %6 {offsets = [0, 2], sizes = [8, 1], strides = [1, 1]} : vector<8x8xf32> to vector<8x1xf32>
    %10 = vector.extract_strided_slice %6 {offsets = [0, 3], sizes = [8, 1], strides = [1, 1]} : vector<8x8xf32> to vector<8x1xf32>
    %11 = vector.extract_strided_slice %6 {offsets = [0, 4], sizes = [8, 1], strides = [1, 1]} : vector<8x8xf32> to vector<8x1xf32>
    %12 = vector.extract_strided_slice %6 {offsets = [0, 5], sizes = [8, 1], strides = [1, 1]} : vector<8x8xf32> to vector<8x1xf32>
    %13 = vector.extract_strided_slice %6 {offsets = [0, 6], sizes = [8, 1], strides = [1, 1]} : vector<8x8xf32> to vector<8x1xf32>
    %14 = vector.extract_strided_slice %6 {offsets = [0, 7], sizes = [8, 1], strides = [1, 1]} : vector<8x8xf32> to vector<8x1xf32>
    %c0_10 = arith.constant 0 : index
    %c0_11 = arith.constant 0 : index
    %c0_12 = arith.constant 0 : index
    %15 = vector.load %arg3[%c0_10, %c0_11, %c0_12] : memref<4x8x256xf32, #tpu.memory_space<vmem>>, vector<1x8x256xf32>
    %16 = vector.shape_cast %15 : vector<1x8x256xf32> to vector<8x256xf32>
    %c1 = arith.constant 1 : index
    %c0_13 = arith.constant 0 : index
    %c0_14 = arith.constant 0 : index
    %17 = vector.load %arg3[%c1, %c0_13, %c0_14] : memref<4x8x256xf32, #tpu.memory_space<vmem>>, vector<1x8x256xf32>
    %18 = vector.shape_cast %17 : vector<1x8x256xf32> to vector<8x256xf32>
    %c2 = arith.constant 2 : index
    %c0_15 = arith.constant 0 : index
    %c0_16 = arith.constant 0 : index
    %19 = vector.load %arg3[%c2, %c0_15, %c0_16] : memref<4x8x256xf32, #tpu.memory_space<vmem>>, vector<1x8x256xf32>
    %20 = vector.shape_cast %19 : vector<1x8x256xf32> to vector<8x256xf32>
    %c3 = arith.constant 3 : index
    %c0_17 = arith.constant 0 : index
    %c0_18 = arith.constant 0 : index
    %21 = vector.load %arg3[%c3, %c0_17, %c0_18] : memref<4x8x256xf32, #tpu.memory_space<vmem>>, vector<1x8x256xf32>
    %22 = vector.shape_cast %21 : vector<1x8x256xf32> to vector<8x256xf32>
    %c0_19 = arith.constant 0 : index
    %c0_20 = arith.constant 0 : index
    %c0_21 = arith.constant 0 : index
    %23 = vector.load %arg1[%c0_19, %c0_20, %c0_21] : memref<2x8x256xf32, #tpu.memory_space<vmem>>, vector<1x8x256xf32>
    %24 = vector.shape_cast %23 : vector<1x8x256xf32> to vector<8x256xf32>
    %cst = arith.constant dense<0.000000e+00> : vector<8x256xf32>
    %25 = tpu.matmul %0, %24, %cst {dimension_numbers = #tpu.dot_dimension_numbers<[1], [0], [0], [1], [0, 0, 1, 1], [], []>} : vector<8x8xf32>, vector<8x256xf32>, vector<8x256xf32> -> vector<8x256xf32>
    %26 = vector.broadcast %1 : vector<8x1xf32> to vector<8x256xf32>
    %27 = arith.addf %25, %26 : vector<8x256xf32>
    %cst_22 = arith.constant 0.000000e+00 : f32
    %28 = vector.broadcast %cst_22 : f32 to vector<8x256xf32>
    %29 = arith.maximumf %27, %28 : vector<8x256xf32>
    %cst_23 = arith.constant dense<0.000000e+00> : vector<8x256xf32>
    %30 = tpu.matmul %2, %29, %cst_23 {dimension_numbers = #tpu.dot_dimension_numbers<[1], [0], [0], [1], [0, 0, 1, 1], [], []>} : vector<8x8xf32>, vector<8x256xf32>, vector<8x256xf32> -> vector<8x256xf32>
    %31 = vector.broadcast %3 : vector<8x1xf32> to vector<8x256xf32>
    %32 = arith.addf %30, %31 : vector<8x256xf32>
    %cst_24 = arith.constant 0.000000e+00 : f32
    %33 = vector.broadcast %cst_24 : f32 to vector<8x256xf32>
    %34 = arith.maximumf %32, %33 : vector<8x256xf32>
    %c1_i32 = arith.constant 1 : i32
    %35 = tpu.dynamic_rotate %29 by %c1_i32 dim 1 : vector<8x256xf32>, i32 -> vector<8x256xf32>
    %36 = arith.mulf %16, %35 : vector<8x256xf32>
    %c255_i32 = arith.constant 255 : i32
    %37 = tpu.dynamic_rotate %29 by %c255_i32 dim 1 : vector<8x256xf32>, i32 -> vector<8x256xf32>
    %38 = arith.mulf %18, %37 : vector<8x256xf32>
    %39 = vector.broadcast %7 : vector<8x1xf32> to vector<8x256xf32>
    %40 = arith.mulf %39, %36 : vector<8x256xf32>
    %41 = vector.broadcast %8 : vector<8x1xf32> to vector<8x256xf32>
    %42 = arith.mulf %41, %29 : vector<8x256xf32>
    %43 = arith.addf %40, %42 : vector<8x256xf32>
    %44 = vector.broadcast %9 : vector<8x1xf32> to vector<8x256xf32>
    %45 = arith.mulf %44, %38 : vector<8x256xf32>
    %46 = arith.addf %43, %45 : vector<8x256xf32>
    %47 = vector.broadcast %10 : vector<8x1xf32> to vector<8x256xf32>
    %48 = arith.addf %46, %47 : vector<8x256xf32>
    %cst_25 = arith.constant 0.000000e+00 : f32
    %49 = vector.broadcast %cst_25 : f32 to vector<8x256xf32>
    %50 = arith.maximumf %48, %49 : vector<8x256xf32>
    %c16_i32 = arith.constant 16 : i32
    %51 = tpu.dynamic_rotate %50 by %c16_i32 dim 1 : vector<8x256xf32>, i32 -> vector<8x256xf32>
    %52 = arith.mulf %20, %51 : vector<8x256xf32>
    %c240_i32 = arith.constant 240 : i32
    %53 = tpu.dynamic_rotate %50 by %c240_i32 dim 1 : vector<8x256xf32>, i32 -> vector<8x256xf32>
    %54 = arith.mulf %22, %53 : vector<8x256xf32>
    %55 = vector.broadcast %11 : vector<8x1xf32> to vector<8x256xf32>
    %56 = arith.mulf %55, %52 : vector<8x256xf32>
    %57 = vector.broadcast %12 : vector<8x1xf32> to vector<8x256xf32>
    %58 = arith.mulf %57, %50 : vector<8x256xf32>
    %59 = arith.addf %56, %58 : vector<8x256xf32>
    %60 = vector.broadcast %13 : vector<8x1xf32> to vector<8x256xf32>
    %61 = arith.mulf %60, %54 : vector<8x256xf32>
    %62 = arith.addf %59, %61 : vector<8x256xf32>
    %63 = vector.broadcast %14 : vector<8x1xf32> to vector<8x256xf32>
    %64 = arith.addf %62, %63 : vector<8x256xf32>
    %cst_26 = arith.constant 0.000000e+00 : f32
    %65 = vector.broadcast %cst_26 : f32 to vector<8x256xf32>
    %66 = arith.maximumf %64, %65 : vector<8x256xf32>
    %cst_27 = arith.constant dense<0.000000e+00> : vector<8x256xf32>
    %67 = tpu.matmul %4, %66, %cst_27 {dimension_numbers = #tpu.dot_dimension_numbers<[1], [0], [0], [1], [0, 0, 1, 1], [], []>} : vector<8x8xf32>, vector<8x256xf32>, vector<8x256xf32> -> vector<8x256xf32>
    %68 = vector.broadcast %5 : vector<8x1xf32> to vector<8x256xf32>
    %69 = arith.addf %67, %68 : vector<8x256xf32>
    %cst_28 = arith.constant 0.000000e+00 : f32
    %70 = vector.broadcast %cst_28 : f32 to vector<8x256xf32>
    %71 = arith.maximumf %69, %70 : vector<8x256xf32>
    %c0_29 = arith.constant 0 : index
    %c0_30 = arith.constant 0 : index
    %c0_31 = arith.constant 0 : index
    %72 = vector.load %arg4[%c0_29, %c0_30, %c0_31] : memref<2x16x256xf32, #tpu.memory_space<vmem>>, vector<1x8x256xf32>
    %73 = vector.shape_cast %72 : vector<1x8x256xf32> to vector<8x256xf32>
    %74 = vector.shape_cast %34 : vector<8x256xf32> to vector<1x8x256xf32>
    tpu.vector_store %arg4[%c0_29, %c0_30, %c0_31], %74 {strides = array<i32>} : memref<2x16x256xf32, #tpu.memory_space<vmem>>, vector<1x8x256xf32>,
    %c0_32 = arith.constant 0 : index
    %c8_33 = arith.constant 8 : index
    %c0_34 = arith.constant 0 : index
    %75 = vector.load %arg4[%c0_32, %c8_33, %c0_34] : memref<2x16x256xf32, #tpu.memory_space<vmem>>, vector<1x8x256xf32>
    %76 = vector.shape_cast %75 : vector<1x8x256xf32> to vector<8x256xf32>
    %77 = vector.shape_cast %71 : vector<8x256xf32> to vector<1x8x256xf32>
    tpu.vector_store %arg4[%c0_32, %c8_33, %c0_34], %77 {strides = array<i32>} : memref<2x16x256xf32, #tpu.memory_space<vmem>>, vector<1x8x256xf32>,
    %c1_35 = arith.constant 1 : index
    %c0_36 = arith.constant 0 : index
    %c0_37 = arith.constant 0 : index
    %78 = vector.load %arg1[%c1_35, %c0_36, %c0_37] : memref<2x8x256xf32, #tpu.memory_space<vmem>>, vector<1x8x256xf32>
    %79 = vector.shape_cast %78 : vector<1x8x256xf32> to vector<8x256xf32>
    %cst_38 = arith.constant dense<0.000000e+00> : vector<8x256xf32>
    %80 = tpu.matmul %0, %79, %cst_38 {dimension_numbers = #tpu.dot_dimension_numbers<[1], [0], [0], [1], [0, 0, 1, 1], [], []>} : vector<8x8xf32>, vector<8x256xf32>, vector<8x256xf32> -> vector<8x256xf32>
    %81 = vector.broadcast %1 : vector<8x1xf32> to vector<8x256xf32>
    %82 = arith.addf %80, %81 : vector<8x256xf32>
    %cst_39 = arith.constant 0.000000e+00 : f32
    %83 = vector.broadcast %cst_39 : f32 to vector<8x256xf32>
    %84 = arith.maximumf %82, %83 : vector<8x256xf32>
    %cst_40 = arith.constant dense<0.000000e+00> : vector<8x256xf32>
    %85 = tpu.matmul %2, %84, %cst_40 {dimension_numbers = #tpu.dot_dimension_numbers<[1], [0], [0], [1], [0, 0, 1, 1], [], []>} : vector<8x8xf32>, vector<8x256xf32>, vector<8x256xf32> -> vector<8x256xf32>
    %86 = vector.broadcast %3 : vector<8x1xf32> to vector<8x256xf32>
    %87 = arith.addf %85, %86 : vector<8x256xf32>
    %cst_41 = arith.constant 0.000000e+00 : f32
    %88 = vector.broadcast %cst_41 : f32 to vector<8x256xf32>
    %89 = arith.maximumf %87, %88 : vector<8x256xf32>
    %c1_i32_42 = arith.constant 1 : i32
    %90 = tpu.dynamic_rotate %84 by %c1_i32_42 dim 1 : vector<8x256xf32>, i32 -> vector<8x256xf32>
    %91 = arith.mulf %16, %90 : vector<8x256xf32>
    %c255_i32_43 = arith.constant 255 : i32
    %92 = tpu.dynamic_rotate %84 by %c255_i32_43 dim 1 : vector<8x256xf32>, i32 -> vector<8x256xf32>
    %93 = arith.mulf %18, %92 : vector<8x256xf32>
    %94 = vector.broadcast %7 : vector<8x1xf32> to vector<8x256xf32>
    %95 = arith.mulf %94, %91 : vector<8x256xf32>
    %96 = vector.broadcast %8 : vector<8x1xf32> to vector<8x256xf32>
    %97 = arith.mulf %96, %84 : vector<8x256xf32>
    %98 = arith.addf %95, %97 : vector<8x256xf32>
    %99 = vector.broadcast %9 : vector<8x1xf32> to vector<8x256xf32>
    %100 = arith.mulf %99, %93 : vector<8x256xf32>
    %101 = arith.addf %98, %100 : vector<8x256xf32>
    %102 = vector.broadcast %10 : vector<8x1xf32> to vector<8x256xf32>
    %103 = arith.addf %101, %102 : vector<8x256xf32>
    %cst_44 = arith.constant 0.000000e+00 : f32
    %104 = vector.broadcast %cst_44 : f32 to vector<8x256xf32>
    %105 = arith.maximumf %103, %104 : vector<8x256xf32>
    %c16_i32_45 = arith.constant 16 : i32
    %106 = tpu.dynamic_rotate %105 by %c16_i32_45 dim 1 : vector<8x256xf32>, i32 -> vector<8x256xf32>
    %107 = arith.mulf %20, %106 : vector<8x256xf32>
    %c240_i32_46 = arith.constant 240 : i32
    %108 = tpu.dynamic_rotate %105 by %c240_i32_46 dim 1 : vector<8x256xf32>, i32 -> vector<8x256xf32>
    %109 = arith.mulf %22, %108 : vector<8x256xf32>
    %110 = vector.broadcast %11 : vector<8x1xf32> to vector<8x256xf32>
    %111 = arith.mulf %110, %107 : vector<8x256xf32>
    %112 = vector.broadcast %12 : vector<8x1xf32> to vector<8x256xf32>
    %113 = arith.mulf %112, %105 : vector<8x256xf32>
    %114 = arith.addf %111, %113 : vector<8x256xf32>
    %115 = vector.broadcast %13 : vector<8x1xf32> to vector<8x256xf32>
    %116 = arith.mulf %115, %109 : vector<8x256xf32>
    %117 = arith.addf %114, %116 : vector<8x256xf32>
    %118 = vector.broadcast %14 : vector<8x1xf32> to vector<8x256xf32>
    %119 = arith.addf %117, %118 : vector<8x256xf32>
    %cst_47 = arith.constant 0.000000e+00 : f32
    %120 = vector.broadcast %cst_47 : f32 to vector<8x256xf32>
    %121 = arith.maximumf %119, %120 : vector<8x256xf32>
    %cst_48 = arith.constant dense<0.000000e+00> : vector<8x256xf32>
    %122 = tpu.matmul %4, %121, %cst_48 {dimension_numbers = #tpu.dot_dimension_numbers<[1], [0], [0], [1], [0, 0, 1, 1], [], []>} : vector<8x8xf32>, vector<8x256xf32>, vector<8x256xf32> -> vector<8x256xf32>
    %123 = vector.broadcast %5 : vector<8x1xf32> to vector<8x256xf32>
    %124 = arith.addf %122, %123 : vector<8x256xf32>
    %cst_49 = arith.constant 0.000000e+00 : f32
    %125 = vector.broadcast %cst_49 : f32 to vector<8x256xf32>
    %126 = arith.maximumf %124, %125 : vector<8x256xf32>
    %c1_50 = arith.constant 1 : index
    %c0_51 = arith.constant 0 : index
    %c0_52 = arith.constant 0 : index
    %127 = vector.load %arg4[%c1_50, %c0_51, %c0_52] : memref<2x16x256xf32, #tpu.memory_space<vmem>>, vector<1x8x256xf32>
    %128 = vector.shape_cast %127 : vector<1x8x256xf32> to vector<8x256xf32>
    %129 = vector.shape_cast %89 : vector<8x256xf32> to vector<1x8x256xf32>
    tpu.vector_store %arg4[%c1_50, %c0_51, %c0_52], %129 {strides = array<i32>} : memref<2x16x256xf32, #tpu.memory_space<vmem>>, vector<1x8x256xf32>,
    %c1_53 = arith.constant 1 : index
    %c8_54 = arith.constant 8 : index
    %c0_55 = arith.constant 0 : index
    %130 = vector.load %arg4[%c1_53, %c8_54, %c0_55] : memref<2x16x256xf32, #tpu.memory_space<vmem>>, vector<1x8x256xf32>
    %131 = vector.shape_cast %130 : vector<1x8x256xf32> to vector<8x256xf32>
    %132 = vector.shape_cast %126 : vector<8x256xf32> to vector<1x8x256xf32>
    tpu.vector_store %arg4[%c1_53, %c8_54, %c0_55], %132 {strides = array<i32>} : memref<2x16x256xf32, #tpu.memory_space<vmem>>, vector<1x8x256xf32>,
    return
  }
  func.func @transform_0(%arg0: i32) -> (i32, i32, i32) {
    %c0_i32 = arith.constant 0 : i32
    %c0_i32_0 = arith.constant 0 : i32
    %c0_i32_1 = arith.constant 0 : i32
    return %arg0, %c0_i32, %c0_i32_0 : i32, i32, i32
  }
  func.func @transform_1(%arg0: i32) -> (i32, i32) {
    %c0_i32 = arith.constant 0 : i32
    %c0_i32_0 = arith.constant 0 : i32
    %c0_i32_1 = arith.constant 0 : i32
    return %c0_i32, %c0_i32_0 : i32, i32
  }
  func.func @transform_2(%arg0: i32) -> (i32, i32, i32) {
    %c0_i32 = arith.constant 0 : i32
    %c0_i32_0 = arith.constant 0 : i32
    %c0_i32_1 = arith.constant 0 : i32
    %c0_i32_2 = arith.constant 0 : i32
    return %c0_i32, %c0_i32_0, %c0_i32_1 : i32, i32, i32
  }
  func.func @transform_3(%arg0: i32) -> (i32, i32, i32) {
    %c0_i32 = arith.constant 0 : i32
    %c0_i32_0 = arith.constant 0 : i32
    %c0_i32_1 = arith.constant 0 : i32
    return %arg0, %c0_i32, %c0_i32_0 : i32, i32, i32
  }
}

</mosaic_0001>

<bundles_post_ra>
// kernel: spark_forward.1
= control target key start
LH: loop header
LB: loop body
LE: loop exit
PB: predicated region body
PF: predicated region fallthrough
CT: control target
= control target key end

     0   :  { %v709_v2 = vmov 0.0   ;;  %vm36_vm0 = vcmask 64512   ;;  %v710_v4 = vmov 8   ;;  %v711_v6 = vmov 1   ;;  %s715_s20 = smov 1   ;;  %s716_s27 = smov 127   ;;  %s966_s0 = inlined_call_operand.vmem [shape: f32[2,8,256], index: 0, kind: input, shape index: {}]   ;;  %s967_s1 = inlined_call_operand.vmem [shape: f32[32,128], index: 1, kind: input, shape index: {}]   ;;  %s968_s2 = inlined_call_operand.vmem [shape: f32[4,8,256], index: 2, kind: input, shape index: {}]   ;;  %s969_s3 = inlined_call_operand.vmem [shape: f32[2,16,256], index: 3, kind: output, shape index: {}]  }
   0x1   :  { %v30_v0 = vld [vmem:[%s966_s0 + $0x8] sm:$0xff]  ;;  %v29_v1 = vld [vmem:[%s966_s0] sm:$0xff]  ;;  %103 = vmatprep.mubr.f32.mxu0 %v709_v2  ;;  %698 = vset.pattern.permute.xlu0 %v710_v4  ;;  %v757_v5 = vld [vmem:[%s967_s1 + $0x18] sm:$0xff]  ;;  %v712_v7 = vmov 0   ;;  %v713_v8 = vmov 2   ;;  %v714_v9 = vmov 3   ;;  %v196_v26 = vlaneseq }
   0x2   :  { %v14_v3 = vld [vmem:[%s967_s1] sm:$0xff]  ;;  %39 = vmatprep.subr.mxu0 %v30_v0  ;;  %700 = vset.pattern.permute.xlu1 %v711_v6  ;;  %v772_v17 = vld [vmem:[%s967_s1 + $0x8] sm:$0xff]  ;;  %v676_v18 = vld [vmem:[%s966_s0 + $0x18] sm:$0xff]  ;;  %v717_v20 = vmov 4   ;;  %v718_v21 = vmov 5   ;;  %s719_s8 = smov 16  }
   0x3   :  { %33 = vperm.xlu0 %698, %v14_v3   ;;  %40 = vmatpush1.msra.mxu0 %v29_v1  ;;  %v675_v19 = vld [vmem:[%s966_s0 + $0x10] sm:$0xff]  ;;  %v799_v28 = vand.u32 127, %v196_v26  ;;  %v18_v32 = vld [vmem:[%s968_s2] sm:$0xff]  ;;  %v19_v40 = vld [vmem:[%s968_s2 + $0x8] sm:$0xff]  ;;  %v720_v1 = vmov 6   ;;  %s722_s9 = smov 112  }
   0x4   :  { %672 = vmatmul.mubr.msk.f32.vlgmr.msra.gmra.mrb[0].mxu0 %vm36_vm0, %v14_v3  ;;  %220 = vperm.xlu1 %700, %v757_v5   ;;  %v811_v34 = vld [vmem:[%s968_s2 + $0x10] sm:$0xff]  ;;  %v667_v46 = vld [vmem:[%s968_s2 + $0x18] sm:$0xff] }
   0x5   :  { %183 = vmatprep.mubr.f32.mxu1 %v709_v2  ;;  %362 = vmatprep.mubr.f32.mxu0 %v709_v2  ;;  %vm198_vm1 = vcmp.lt.s32.totalorder %v799_v28, 1  ;;  %vm207_vm2 = vcmp.lt.s32.totalorder %v799_v28, 127  ;;  %vm247_vm3 = vcmp.lt.s32.totalorder %v799_v28, 16  ;;  %vm256_vm4 = vcmp.lt.s32.totalorder %v799_v28, 112 }
   0x7   :  { %699 = vset.pattern.permute.xlu0 %v712_v7 }
   0x8   :  { %214 = vperm.xlu0 %699, %v757_v5   ;;  %701 = vset.pattern.permute.xlu1 %v713_v8 }
   0x9   :  { %228 = vperm.xlu1 %701, %v757_v5  }
   0xc   :  { %703 = vset.pattern.permute.xlu0 %v717_v20 }
   0xd   :  { %702 = vset.pattern.permute.xlu1 %v714_v9 }
   0xe   :  { %236 = vperm.xlu1 %702, %v757_v5  }
  0x12   :  { %704 = vset.pattern.permute.xlu1 %v718_v21 }
  0x82   :  { %v34_v10 = vpop.permute.xlu0 %33 }
  0x83   :  { %v791_v22 = vpop.permute.xlu1 %220 }
  0x87   :  { %v797_v25 = vpop.permute.xlu0 %214 }
  0x88   :  { %v793_v23 = vpop.permute.xlu1 %228 }
  0x8d   :  { %v795_v24 = vpop.permute.xlu1 %236 }
  0xd7   :  { %v105_v11 = vpop.f32.mrb[0].mxu0 }
  0xd8   :  { %v106_v12 = vadd.f32 %v105_v11, %v34_v10  ;;  %v107_v13 = vpop.f32.mrb[1].mxu0 }
  0xd9   :  { %v108_v14 = vadd.f32 %v107_v13, %v34_v10 }
  0xda   :  { %v110_v15 = vmax.f32 %v106_v12, 0.0 }
  0xdb   :  { %v766_v16 = vmax.f32 %v108_v14, 0.0 }
  0xdc   :  { %192 = vrot.lane.b32.xlu1 %v110_v15, %s715_s20  ;;  %v223_v49 = vmul.f32 %v791_v22, %v110_v15 }
  0xdd   :  { %194 = vrot.lane.b32.xlu0 %v766_v16, %s715_s20  ;;  %119 = vmatprep.subr.mxu1 %v766_v16  ;;  %v224_v58 = vmul.f32 %v791_v22, %v766_v16 }
  0xde   :  { %120 = vmatpush1.msra.mxu1 %v110_v15 }
  0xdf   :  { %673 = vmatmul.mubr.msk.f32.vlgmr.msra.gmra.mrb[0].mxu1 %vm36_vm0, %v772_v17  ;;  %378 = vmatprep.subr.mxu1 %v676_v18 }
  0xe0   :  { %203 = vrot.lane.b32.xlu1 %v110_v15, %s716_s27  ;;  %379 = vmatpush1.msra.mxu1 %v675_v19 }
  0xe1   :  { %205 = vrot.lane.b32.xlu0 %v766_v16, %s716_s27  ;;  %442 = vmatprep.mubr.f32.mxu1 %v709_v2 }
  0xe3   :  { %677 = vmatmul.mubr.msk.f32.vlgmr.msra.gmra.mrb[2].mxu1 %vm36_vm0, %v14_v3  ;;  %v721_v3 = vmov 7  }
  0xe4   :  { %648 = vmatprep.mubr.f32.mxu1 %v709_v2 }
 0x14e   :  { %v193_v27 = vpop.permute.xlu1 %192 }
 0x14f   :  { %v195_v29 = vpop.permute.xlu0 %194 }
 0x150   :  { %v200_v33 = vsel %vm198_vm1, %v195_v29, %v193_v27  ;;  %v199_v41 = vsel %vm198_vm1, %v193_v27, %v195_v29 }
 0x151   :  { %v201_v37 = vmul.f32 %v200_v33, %v18_v32  ;;  %v202_v50 = vmul.f32 %v199_v41, %v19_v40 }
 0x152   :  { %v204_v30 = vpop.permute.xlu1 %203 }
 0x153   :  { %v206_v31 = vpop.permute.xlu0 %205  ;;  %v217_v43 = vmul.f32 %v797_v25, %v201_v37  ;;  %v218_v56 = vmul.f32 %v797_v25, %v202_v50  ;;  %v671_v50 = vld [vmem:[%s968_s2 + $0x38] sm:$0xff] }
 0x154   :  { %v208_v35 = vsel %vm207_vm2, %v204_v30, %v206_v31  ;;  %v209_v47 = vsel %vm207_vm2, %v206_v31, %v204_v30 }
 0x155   :  { %v210_v39 = vmul.f32 %v811_v34, %v208_v35  ;;  %v225_v54 = vadd.f32 %v223_v49, %v217_v43  ;;  %v211_v55 = vmul.f32 %v667_v46, %v209_v47  ;;  %v226_v60 = vadd.f32 %v224_v58, %v218_v56  ;;  %v669_v43 = vld [vmem:[%s968_s2 + $0x28] sm:$0xff]  ;;  %v670_v49 = vld [vmem:[%s968_s2 + $0x30] sm:$0xff] }
 0x157   :  { %v231_v51 = vmul.f32 %v793_v23, %v210_v39  ;;  %v232_v59 = vmul.f32 %v793_v23, %v211_v55 }
 0x159   :  { %v233_v57 = vadd.f32 %v231_v51, %v225_v54  ;;  %v234_v62 = vadd.f32 %v232_v59, %v226_v60 }
 0x15b   :  { %v239_v61 = vadd.f32 %v795_v24, %v233_v57  ;;  %v240_v0 = vadd.f32 %v795_v24, %v234_v62 }
 0x15d   :  { %v852_v63 = vmax.f32 %v239_v61, 0.0  ;;  %v860_v6 = vmax.f32 %v240_v0, 0.0 }
 0x1b2   :  { %v815_v36 = vpop.f32.mrb[0].mxu1 }
 0x1b3   :  { %v817_v38 = vpop.f32.mrb[1].mxu1 }
 0x1b6   :  { %v444_v42 = vpop.f32.mrb[2].mxu1 }
 0x1b7   :  { %v445_v44 = vadd.f32 %v444_v42, %v34_v10  ;;  %v446_v45 = vpop.f32.mrb[3].mxu1  ;;  %v668_v42 = vld [vmem:[%s968_s2 + $0x20] sm:$0xff] }
 0x1b8   :  { %v447_v48 = vadd.f32 %v446_v45, %v34_v10 }
 0x1b9   :  { %v833_v52 = vmax.f32 %v445_v44, 0.0 }
 0x1ba   :  { %v835_v53 = vmax.f32 %v447_v48, 0.0 }
 0x1bb   :  { %524 = vrot.lane.b32.xlu0 %v833_v52, %s715_s20  ;;  %v542_v18 = vmul.f32 %v833_v52, %v791_v22 }
 0x1bc   :  { %526 = vrot.lane.b32.xlu1 %v835_v53, %s715_s20  ;;  %v543_v19 = vmul.f32 %v835_v53, %v791_v22 }
 0x1bf   :  { %532 = vrot.lane.b32.xlu0 %v833_v52, %s716_s27 }
 0x1c0   :  { %534 = vrot.lane.b32.xlu1 %v835_v53, %s716_s27 }
 0x1c3   :  { %262 = vperm.xlu0 %703, %v757_v5  }
 0x1c4   :  { %268 = vperm.xlu1 %704, %v757_v5  }
 0x1c7   :  { %243 = vrot.lane.b32.xlu0 %v852_v63, %s719_s8 }
 0x1c8   :  { %705 = vset.pattern.permute.xlu1 %v720_v1  ;;  %706 = vset.pattern.permute.xlu0 %v721_v3 }
 0x1c9   :  { %276 = vperm.xlu1 %705, %v757_v5  }
 0x1cb   :  { %252 = vrot.lane.b32.xlu0 %v852_v63, %s722_s9 }
 0x1cd   :  { %245 = vrot.lane.b32.xlu1 %v860_v6, %s719_s8 }
 0x1ce   :  { %708 = vset.pattern.permute.xlu1 %v710_v4 }
 0x1cf   :  { %284 = vperm.xlu0 %706, %v757_v5  }
 0x1d1   :  { %254 = vrot.lane.b32.xlu1 %v860_v6, %s722_s9 }
 0x1d3   :  { %707 = vset.pattern.permute.xlu0 %v710_v4 }
 0x22d   :  { %v525_v7 = vpop.permute.xlu0 %524 }
 0x22e   :  { %v527_v8 = vpop.permute.xlu1 %526 }
 0x22f   :  { %v528_v9 = vsel %vm198_vm1, %v525_v7, %v527_v8  ;;  %v529_v10 = vsel %vm198_vm1, %v527_v8, %v525_v7 }
 0x230   :  { %v530_v11 = vmul.f32 %v529_v10, %v18_v32  ;;  %v531_v12 = vmul.f32 %v528_v9, %v19_v40 }
 0x231   :  { %v533_v13 = vpop.permute.xlu0 %532 }
 0x232   :  { %v540_v14 = vmul.f32 %v530_v11, %v797_v25  ;;  %v541_v5 = vmul.f32 %v531_v12, %v797_v25  ;;  %v535_v15 = vpop.permute.xlu1 %534 }
 0x233   :  { %v536_v16 = vsel %vm207_vm2, %v533_v13, %v535_v15  ;;  %v537_v4 = vsel %vm207_vm2, %v535_v15, %v533_v13 }
 0x234   :  { %v538_v20 = vmul.f32 %v811_v34, %v536_v16  ;;  %v539_v21 = vmul.f32 %v667_v46, %v537_v4  ;;  %v544_v26 = vadd.f32 %v542_v18, %v540_v14  ;;  %v545_v27 = vadd.f32 %v543_v19, %v541_v5 }
 0x236   :  { %v546_v25 = vmul.f32 %v538_v20, %v793_v23  ;;  %v547_v29 = vmul.f32 %v539_v21, %v793_v23 }
 0x238   :  { %v548_v30 = vadd.f32 %v546_v25, %v544_v26  ;;  %v549_v31 = vadd.f32 %v547_v29, %v545_v27 }
 0x23a   :  { %v550_v32 = vadd.f32 %v548_v30, %v795_v24  ;;  %v551_v35 = vadd.f32 %v549_v31, %v795_v24  ;;  %v896_v24 = vld [vmem:[%s967_s1 + $0x10] sm:$0xff] }
 0x23c   :  { %v552_v33 = vmax.f32 %v550_v32, 0.0  ;;  %v553_v22 = vmax.f32 %v551_v35, 0.0 }
 0x23e   :  { %562 = vrot.lane.b32.xlu0 %v552_v33, %s722_s9  ;;  %554 = vrot.lane.b32.xlu1 %v552_v33, %s719_s8 }
 0x242   :  { %114 = vperm.xlu0 %707, %v772_v17   ;;  %556 = vrot.lane.b32.xlu1 %v553_v22, %s719_s8  ;;  %v263_v37 = vpop.permute.xlu0 %262 }
 0x243   :  { %v269_v34 = vpop.permute.xlu1 %268 }
 0x244   :  { %v572_v39 = vmul.f32 %v552_v33, %v269_v34  ;;  %v573_v23 = vmul.f32 %v553_v22, %v269_v34  ;;  %v271_v59 = vmul.f32 %v269_v34, %v852_v63  ;;  %v272_v60 = vmul.f32 %v269_v34, %v860_v6 }
 0x246   :  { %564 = vrot.lane.b32.xlu1 %v553_v22, %s722_s9  ;;  %v244_v41 = vpop.permute.xlu0 %243 }
 0x248   :  { %v277_v40 = vpop.permute.xlu1 %276 }
 0x24a   :  { %293 = vperm.xlu1 %708, %v896_v24   ;;  %v253_v51 = vpop.permute.xlu0 %252 }
 0x24c   :  { %v246_v44 = vpop.permute.xlu1 %245 }
 0x24d   :  { %v248_v45 = vsel %vm247_vm3, %v244_v41, %v246_v44  ;;  %v249_v46 = vsel %vm247_vm3, %v246_v44, %v244_v41 }
 0x24e   :  { %v250_v47 = vmul.f32 %v668_v42, %v249_v46  ;;  %v251_v48 = vmul.f32 %v669_v43, %v248_v45  ;;  %v285_v8 = vpop.permute.xlu0 %284 }
 0x250   :  { %v265_v54 = vmul.f32 %v263_v37, %v250_v47  ;;  %v266_v55 = vmul.f32 %v263_v37, %v251_v48  ;;  %v255_v56 = vpop.permute.xlu1 %254 }
 0x251   :  { %v257_v57 = vsel %vm256_vm4, %v253_v51, %v255_v56  ;;  %v258_v58 = vsel %vm256_vm4, %v255_v56, %v253_v51 }
 0x252   :  { %v259_v61 = vmul.f32 %v670_v49, %v257_v57  ;;  %v260_v62 = vmul.f32 %v671_v50, %v258_v58  ;;  %v273_v0 = vadd.f32 %v271_v59, %v265_v54  ;;  %v274_v1 = vadd.f32 %v272_v60, %v266_v55 }
 0x254   :  { %v279_v3 = vmul.f32 %v277_v40, %v259_v61  ;;  %v280_v7 = vmul.f32 %v277_v40, %v260_v62 }
 0x256   :  { %v281_v9 = vadd.f32 %v279_v3, %v273_v0  ;;  %v282_v10 = vadd.f32 %v280_v7, %v274_v1 }
 0x258   :  { %v287_v11 = vadd.f32 %v285_v8, %v281_v9  ;;  %v288_v12 = vadd.f32 %v285_v8, %v282_v10 }
 0x25a   :  { %v289_v13 = vmax.f32 %v287_v11, 0.0  ;;  %v290_v14 = vmax.f32 %v288_v12, 0.0 }
 0x25c   :  { %298 = vmatprep.subr.mxu0 %v290_v14 }
 0x25d   :  { %299 = vmatpush1.msra.mxu0 %v289_v13 }
 0x25e   :  { %451 = vmatprep.subr.mxu0 %v835_v53  ;;  %674 = vmatmul.mubr.msk.f32.vlgmr.msra.gmra.mrb[2].mxu0 %vm36_vm0, %v896_v24 }
 0x25f   :  { %452 = vmatpush1.msra.mxu0 %v833_v52  ;;  %515 = vmatprep.mubr.f32.mxu0 %v709_v2 }
 0x262   :  { %678 = vmatmul.mubr.msk.f32.vlgmr.msra.gmra.mrb[4].mxu0 %vm36_vm0, %v772_v17 }
 0x2b0   :  { %v555_v63 = vpop.permute.xlu1 %554  ;;  %v563_v4 = vpop.permute.xlu0 %562 }
 0x2b4   :  { %v557_v6 = vpop.permute.xlu1 %556 }
 0x2b5   :  { %v558_v5 = vsel %vm247_vm3, %v555_v63, %v557_v6  ;;  %v559_v15 = vsel %vm247_vm3, %v557_v6, %v555_v63 }
 0x2b6   :  { %v560_v16 = vmul.f32 %v668_v42, %v559_v15  ;;  %v561_v53 = vmul.f32 %v669_v43, %v558_v5 }
 0x2b8   :  { %v570_v18 = vmul.f32 %v560_v16, %v263_v37  ;;  %v571_v19 = vmul.f32 %v561_v53, %v263_v37  ;;  %v565_v20 = vpop.permute.xlu1 %564 }
 0x2b9   :  { %v566_v2 = vsel %vm256_vm4, %v563_v4, %v565_v20  ;;  %v567_v17 = vsel %vm256_vm4, %v565_v20, %v563_v4 }
 0x2ba   :  { %v568_v52 = vmul.f32 %v670_v49, %v566_v2  ;;  %v569_v21 = vmul.f32 %v671_v50, %v567_v17  ;;  %v574_v26 = vadd.f32 %v572_v39, %v570_v18  ;;  %v575_v27 = vadd.f32 %v573_v23, %v571_v19 }
 0x2bc   :  { %v576_v25 = vmul.f32 %v568_v52, %v277_v40  ;;  %v577_v29 = vmul.f32 %v569_v21, %v277_v40 }
 0x2be   :  { %v578_v30 = vadd.f32 %v576_v25, %v574_v26  ;;  %v579_v31 = vadd.f32 %v577_v29, %v575_v27 }
 0x2c0   :  { %v581_v32 = vadd.f32 %v579_v31, %v285_v8  ;;  %v580_v33 = vadd.f32 %v578_v30, %v285_v8 }
 0x2c1   :  { %v115_v35 = vpop.permute.xlu0 %114 }
 0x2c2   :  { %v186_v22 = vadd.f32 %v815_v36, %v115_v35  ;;  %v188_v34 = vadd.f32 %v817_v38, %v115_v35  ;;  %v583_v37 = vmax.f32 %v581_v32, 0.0  ;;  %v582_v41 = vmax.f32 %v580_v33, 0.0 }
 0x2c4   :  { %v190_v42 = vmax.f32 %v186_v22, 0.0  ;;  %v191_v28 = vmax.f32 %v188_v34, 0.0  ;;  %584 = vmatprep.subr.mxu1 %v583_v37 }
 0x2c5   :  { %585 = vmatpush1.msra.mxu1 %v582_v41 }
 0x2c6   :  { %371 = vst [vmem:[%s969_s3] sm:$0xff] %v190_v42  ;;  %372 = vst [vmem:[%s969_s3 + $0x8] sm:$0xff] %v191_v28  ;;  %679 = vmatmul.mubr.msk.f32.vlgmr.msra.gmra.mrb[4].mxu1 %vm36_vm0, %v896_v24 }
 0x2c9   :  { %v294_v36 = vpop.permute.xlu1 %293 }
 0x331   :  { %v364_v39 = vpop.f32.mrb[2].mxu0 }
 0x332   :  { %v366_v38 = vpop.f32.mrb[3].mxu0  ;;  %v365_v23 = vadd.f32 %v364_v39, %v294_v36 }
 0x333   :  { %v367_v40 = vadd.f32 %v366_v38, %v294_v36 }
 0x334   :  { %v369_v43 = vmax.f32 %v365_v23, 0.0 }
 0x335   :  { %v370_v44 = vmax.f32 %v367_v40, 0.0  ;;  %v517_v45 = vpop.f32.mrb[4].mxu0 }
 0x336   :  { %373 = vst [vmem:[%s969_s3 + $0x10] sm:$0xff] %v369_v43  ;;  %v518_v46 = vadd.f32 %v517_v45, %v115_v35  ;;  %v519_v47 = vpop.f32.mrb[5].mxu0 }
 0x337   :  { %374 = vst [vmem:[%s969_s3 + $0x18] sm:$0xff] %v370_v44  ;;  %v520_v48 = vadd.f32 %v519_v47, %v115_v35 }
 0x338   :  { %v522_v24 = vmax.f32 %v518_v46, 0.0 }
 0x339   :  { %v523_v49 = vmax.f32 %v520_v48, 0.0 }
 0x33a   :  { %680 = vst [vmem:[%s969_s3 + $0x20] sm:$0xff] %v522_v24 }
 0x33b   :  { %681 = vst [vmem:[%s969_s3 + $0x28] sm:$0xff] %v523_v49 }
 0x399   :  { %v650_v50 = vpop.f32.mrb[4].mxu1 }
 0x39a   :  { %v651_v51 = vadd.f32 %v650_v50, %v294_v36  ;;  %v652_v54 = vpop.f32.mrb[5].mxu1 }
 0x39b   :  { %v653_v55 = vadd.f32 %v652_v54, %v294_v36 }
 0x39c   :  { %v655_v56 = vmax.f32 %v651_v51, 0.0 }
 0x39d   :  { %v656_v57 = vmax.f32 %v653_v55, 0.0 }
 0x39e   :  { %682 = vst [vmem:[%s969_s3 + $0x30] sm:$0xff] %v655_v56 }
 0x39f   :  { %683 = vst [vmem:[%s969_s3 + $0x38] sm:$0xff] %v656_v57 }

</bundles_post_ra>
